<compile_context>
chip_gen: v7x
topology: tpu7x:2x2x1
jax: 0.10.0
libtpu: 0.0.40
codegen_flags: <defaults>
</compile_context>

<pallas_src>
import functools
import math

import jax
import jax.numpy as jnp
from jax.experimental import pallas as pl
from jax.experimental.pallas import tpu as pltpu


# ----------------------------------------------------------------------------
# Parameter / basis construction (deterministic, mirrors the PyTorch __init__)
# ----------------------------------------------------------------------------
def _build_cos_basis(T_no, cos_basis_no=24, scale=6.0, shift=1.0):
    t = jnp.arange(T_no, dtype=jnp.float32)
    raw_cos = scale * jnp.log(t + shift + 1e-7)
    rows = []
    for i in range(cos_basis_no):
        phi = 1.5707963267948966 * i
        xmin = phi - math.pi
        xmax = phi + math.pi
        basis = 0.5 * jnp.cos(raw_cos - phi) + 0.5
        basis = jnp.where((raw_cos < xmin) | (raw_cos > xmax), 0.0, basis)
        rows.append(basis)
    return jnp.stack(rows, axis=0)  # (cos_basis_no, T_no)


def init_params(key, sub_no, E_no, I_no, T_no, hid_no):
    cos_basis_no = 24
    k1, k2, k3, k4 = jax.random.split(key, 4)
    return dict(
        E_scale=jnp.zeros((E_no,), jnp.float32),
        I_scale=jnp.zeros((I_no,), jnp.float32),
        W_e_layer1=0.01 * jax.random.normal(k1, (sub_no * hid_no, cos_basis_no), jnp.float32),
        W_i_layer1=0.01 * jax.random.normal(k2, (sub_no * hid_no, cos_basis_no), jnp.float32),
        W_layer2=-1.0 * jnp.ones((sub_no, hid_no), jnp.float32),
        b_layer1=jnp.zeros((sub_no * hid_no,), jnp.float32),
        C_syn_e_raw=0.1 * jax.random.normal(k3, (sub_no, E_no), jnp.float32) + 1.0 / sub_no,
        C_syn_i_raw=0.1 * jax.random.normal(k4, (sub_no, I_no), jnp.float32) + 1.0 / sub_no,
        V_o=jnp.zeros((1,), jnp.float32),
        kern_basis=_build_cos_basis(T_no, cos_basis_no),
    )


# ----------------------------------------------------------------------------
# sparsemax / sparsestmax (tiny per-column ops -> plain JAX glue)
# ----------------------------------------------------------------------------
def _sparsemax(v):
    n = v.shape[0]
    v_sorted = jnp.sort(v)[::-1]
    cssv = jnp.cumsum(v_sorted) - 1.0
    ind = jnp.arange(1, n + 1, dtype=v.dtype)
    cond = (v_sorted - cssv / ind) > 0
    rho_idx = jnp.max(jnp.where(cond, jnp.arange(n), -1))
    rho = (rho_idx + 1).astype(v.dtype)
    tau = cssv[rho_idx] / rho
    return jnp.clip(v - tau, 0.0, None)


def _sparsestmax(v, rad):
    w = _sparsemax(v)
    ind = (w > 0).astype(v.dtype)
    u = ind / jnp.sum(ind)
    diff = w - u
    distance = jnp.sqrt(jnp.sum(diff * diff))
    safe_dist = jnp.where(distance == 0.0, 1.0, distance)
    p = rad * diff / safe_dist + u
    p_clipped = jnp.clip(p, 0.0, 1.0)
    return_w = ((jnp.max(w) - jnp.min(w)) == 1.0) | (distance >= rad)
    # TODO(synk): recursive re-projection branch of sparsestmax (min(p) < 0)
    # is not replicated; a single projection step is used (exact for rad=0).
    return jnp.where(return_w, w, p_clipped)


# ----------------------------------------------------------------------------
# Pallas kernel: BB batch elements per grid step
# ----------------------------------------------------------------------------
def _glm_kernel(s_ref, wrep_ref, m_ref, b_ref, w2_ref, final_ref, x_ref,
                *, T_no, S2):
    BB, T_data, EI = s_ref.shape
    K = x_ref.shape[-1]               # = T_no * S2
    C = m_ref.shape[1]
    R = BB * T_data

    # (1) merged E|I clustering matmul (scales pre-folded into the weight);
    #     the weight is lane-replicated across all T_no tap blocks so each
    #     tap's source already sits at its destination lane offset.
    s_cat = s_ref[...].reshape(R, EI)
    syn_rep = jnp.dot(s_cat, wrep_ref[...],
                      preferred_element_type=jnp.float32).reshape(BB, T_data, K)

    # (2) causal zero halo: only rows [0, T_no) of the im2col scratch can be
    #     left untouched by the tap stores.  Dense 128-lane zero store, re-done
    #     every step so the kernel stays correct when the parallel batch axis
    #     is sharded across TensorCores (each core owns its own scratch).
    x_ref[:, 0:T_no, :] = jnp.zeros((BB, T_no, K), jnp.float32)

    # (3) lane-dense im2col by scatter-store: tap j (causal delay d=T_no-1-j)
    #     lands at lane block [j*S2,(j+1)*S2) with row offset d.  Replaces the
    #     16 narrow 8-lane loads + in-register lane concat of the previous
    #     version; source lanes == destination lanes, so no lane rotation.
    for j in range(T_no):
        d = T_no - 1 - j
        lo = j * S2
        x_ref[:, d:d + T_data, lo:lo + S2] = syn_rep[:, :, lo:lo + S2]

    # (4) grouped causal conv (E + I) as ONE matmul fed by a single contiguous
    #     128-lane load, then the layer-2 readout.
    x = x_ref[:, 0:T_data, :].reshape(R, K)
    conv = jnp.dot(x, m_ref[...], preferred_element_type=jnp.float32)   # (R, C)
    layer1 = jnp.tanh(conv + b_ref[...])
    weighted = (layer1 * w2_ref[...]).reshape(BB, T_data, C)
    final_ref[...] = jnp.sum(weighted, axis=-1).reshape(1, BB, T_data)


def _pick_batch_block(batch, T_data, target_rows=256):
    """Largest divisor BB of batch with BB*T_data <= ~256 MXU rows, keeping the
    parallel grid length >= 2 whenever batch >= 2 (megacore / 2-TC chips)."""
    best = 1
    for d in range(1, batch + 1):
        if batch % d:
            continue
        if d * T_data > max(target_rows, T_data):
            continue
        if batch >= 2 and batch // d < 2:
            continue
        best = d
    return best


# ----------------------------------------------------------------------------
# Forward wrapper (parameter preprocessing + pallas_call)
# ----------------------------------------------------------------------------
def sub_sparse_clust_cos_glm_forward(params, S_e, S_i, rad, test):
    sub_no, E_no = params["C_syn_e_raw"].shape
    _, I_no = params["C_syn_i_raw"].shape
    hid_no = params["W_layer2"].shape[1]
    T_no = params["kern_basis"].shape[1]
    batch, T_data, _ = S_e.shape
    C = sub_no * hid_no
    S2 = 2 * sub_no
    EI = E_no + I_no
    K = T_no * S2     # = 128 for the demo; keep near the 128-deep MXU K dim

    assert T_data % 8 == 0, "T_data must be a multiple of 8"
    assert T_data >= T_no, "T_data must be >= T_no (time axis is not blocked)"

    if test:
        C_syn_e = jax.nn.one_hot(jnp.argmax(params["C_syn_e_raw"], axis=0),
                                 sub_no, dtype=jnp.float32).T
        C_syn_i = jax.nn.one_hot(jnp.argmax(params["C_syn_i_raw"], axis=0),
                                 sub_no, dtype=jnp.float32).T
    else:
        C_syn_e = jax.vmap(_sparsestmax, in_axes=(1, None), out_axes=1)(
            params["C_syn_e_raw"], rad)
        C_syn_i = jax.vmap(_sparsestmax, in_axes=(1, None), out_axes=1)(
            params["C_syn_i_raw"], rad)

    # exp(E_scale)/exp(I_scale) folded into the (block-diagonal) clustering
    # weight -- mathematically identical (per-input-column diagonal scaling).
    w_e = C_syn_e.T * jnp.exp(params["E_scale"])[:, None]     # (E_no, sub_no)
    w_i = C_syn_i.T * jnp.exp(params["I_scale"])[:, None]     # (I_no, sub_no)
    W_clust = jnp.zeros((EI, S2), jnp.float32)
    W_clust = W_clust.at[:E_no, :sub_no].set(w_e)
    W_clust = W_clust.at[E_no:, sub_no:].set(w_i)
    W_rep = jnp.tile(W_clust, (1, T_no))                      # (EI, K)

    # flipped temporal kernels from cosine basis -> merged block-diagonal conv
    # weight M_cat[j*S2 + s, c]  (E taps on lanes s < sub_no, I taps above).
    flipk_e = jnp.flip(params["W_e_layer1"] @ params["kern_basis"], axis=1)
    flipk_i = jnp.flip(params["W_i_layer1"] @ params["kern_basis"], axis=1)
    mask = ((jnp.arange(C) // hid_no)[None, :] == jnp.arange(sub_no)[:, None]
            ).astype(jnp.float32)                             # (sub_no, C)
    m_e = mask[None, :, :] * flipk_e.T[:, None, :]            # (T_no, sub_no, C)
    m_i = mask[None, :, :] * flipk_i.T[:, None, :]
    M_cat = jnp.concatenate([m_e, m_i], axis=1).reshape(K, C)

    b2 = params["b_layer1"].reshape(1, C)
    w2 = jnp.exp(params["W_layer2"]).reshape(1, C)

    # single concatenated input stream (E|I on lanes)
    s_cat = jnp.concatenate([S_e, S_i], axis=-1)              # (batch, T_data, EI)

    BB = _pick_batch_block(batch, T_data)
    assert batch % BB == 0
    ROWS = ((T_data + T_no - 1 + 7) // 8) * 8                 # im2col scratch rows
    grid = (batch // BB,)

    kernel = functools.partial(_glm_kernel, T_no=T_no, S2=S2)

    # TODO(synk): for large T_data, block the time axis (with a T_no-1 halo
    # re-read) so per-step VMEM stays bounded; at demo shapes the whole time
    # window fits comfortably in VMEM.
    final3 = pl.pallas_call(
        kernel,
        out_shape=jax.ShapeDtypeStruct((batch // BB, BB, T_data), jnp.float32),
        grid_spec=pltpu.PrefetchScalarGridSpec(
            num_scalar_prefetch=0,
            grid=grid,
            in_specs=[
                pl.BlockSpec((BB, T_data, EI), lambda g: (g, 0, 0)),
                pl.BlockSpec((EI, K), lambda g: (0, 0)),
                pl.BlockSpec((K, C), lambda g: (0, 0)),
                pl.BlockSpec((1, C), lambda g: (0, 0)),
                pl.BlockSpec((1, C), lambda g: (0, 0)),
            ],
            out_specs=pl.BlockSpec((1, BB, T_data), lambda g: (g, 0, 0)),
            scratch_shapes=[
                pltpu.VMEM((BB, ROWS, K), jnp.float32),       # lane-dense im2col
            ],
        ),
        compiler_params=pltpu.CompilerParams(dimension_semantics=("parallel",)),
    )(s_cat, W_rep, M_cat, b2, w2)

    # V_o added outside the kernel (drops a (1,1) kernel input block).
    final = final3.reshape(batch, T_data) + params["V_o"][0]
    return final, C_syn_e, C_syn_i


# ----------------------------------------------------------------------------
# Pure-JAX reference (mirrors the PyTorch forward) for correctness check
# ----------------------------------------------------------------------------
def reference_forward(params, S_e, S_i, C_syn_e, C_syn_i):
    sub_no, _ = C_syn_e.shape
    hid_no = params["W_layer2"].shape[1]
    T_no = params["kern_basis"].shape[1]
    batch, T_data, _ = S_e.shape

    S_e = S_e * jnp.exp(params["E_scale"])[None, None, :]
    S_i = S_i * jnp.exp(params["I_scale"])[None, None, :]
    syn_e = jnp.einsum("bte,se->bts", S_e, C_syn_e)
    syn_i = jnp.einsum("bti,si->bts", S_i, C_syn_i)
    pad_e = jnp.transpose(jnp.pad(syn_e, ((0, 0), (T_no - 1, 0), (0, 0))), (0, 2, 1))
    pad_i = jnp.transpose(jnp.pad(syn_i, ((0, 0), (T_no - 1, 0), (0, 0))), (0, 2, 1))

    flipk_e = jnp.flip(params["W_e_layer1"] @ params["kern_basis"], axis=1)[:, None, :]
    flipk_i = jnp.flip(params["W_i_layer1"] @ params["kern_basis"], axis=1)[:, None, :]
    dn = jax.lax.conv_dimension_numbers(pad_e.shape, flipk_e.shape, ("NCH", "OIH", "NCH"))
    conv_e = jax.lax.conv_general_dilated(pad_e, flipk_e, (1,), "VALID",
                                          dimension_numbers=dn,
                                          feature_group_count=sub_no)
    conv_i = jax.lax.conv_general_dilated(pad_i, flipk_i, (1,), "VALID",
                                          dimension_numbers=dn,
                                          feature_group_count=sub_no)
    layer1 = jnp.tanh(conv_e + conv_i + params["b_layer1"][None, :, None])
    layer1 = layer1.reshape(batch, sub_no, hid_no, T_data)
    w2 = jnp.exp(params["W_layer2"]).reshape(1, sub_no, hid_no, 1)
    sub_out = jnp.sum(layer1 * w2, axis=2)            # (batch, sub_no, T_data)
    return jnp.sum(sub_out, axis=1) + params["V_o"][0]


# ----------------------------------------------------------------------------
if __name__ == "__main__":
    sub_no, E_no, I_no, T_no, hid_no = 4, 8, 6, 16, 4
    batch, T_data = 2, 32

    key = jax.random.PRNGKey(0)
    kp, ke, ki = jax.random.split(key, 3)
    params = init_params(kp, sub_no, E_no, I_no, T_no, hid_no)
    S_e = jax.random.uniform(ke, (batch, T_data, E_no), jnp.float32)
    S_i = jax.random.uniform(ki, (batch, T_data, I_no), jnp.float32)

    final, C_syn_e, C_syn_i = sub_sparse_clust_cos_glm_forward(
        params, S_e, S_i, rad=0.0, test=False)
    jax.block_until_ready(final)

    ref = reference_forward(params, S_e, S_i, C_syn_e, C_syn_i)
    assert final.shape == (batch, T_data)
    assert C_syn_e.shape == (sub_no, E_no) and C_syn_i.shape == (sub_no, I_no)
    assert jnp.max(jnp.abs(final - ref)) < 1e-3, "mismatch vs pure-JAX reference"

    print("KERNEL_OK")
</pallas_src>

<mosaic_0001>
module attributes {stable_mosaic.version = 11 : i64} {
  func.func @_glm_kernel(%arg0: i32, %arg1: memref<1x32x14xf32, #tpu.memory_space<vmem>>, %arg2: memref<14x128xf32, #tpu.memory_space<vmem>>, %arg3: memref<128x16xf32, #tpu.memory_space<vmem>>, %arg4: memref<1x16xf32, #tpu.memory_space<vmem>>, %arg5: memref<1x16xf32, #tpu.memory_space<vmem>>, %arg6: memref<1x1x32xf32, #tpu.memory_space<vmem>>, %arg7: memref<1x48x128xf32, #tpu.memory_space<vmem>>) attributes {dimension_semantics = [#tpu.dimension_semantics<parallel>], iteration_bounds = array<i64: 2>, scalar_prefetch = 0 : i64, scratch_operands = 1 : i64, tpu.core_type = #tpu.core_type<tc>, window_params = [{transform_indices = @transform_0, window_bounds = array<i64: 1, 32, 14>}, {pipeline_mode = #tpu.pipeline_mode<synchronous>, transform_indices = @transform_1, window_bounds = array<i64: 14, 128>}, {pipeline_mode = #tpu.pipeline_mode<synchronous>, transform_indices = @transform_2, window_bounds = array<i64: 128, 16>}, {pipeline_mode = #tpu.pipeline_mode<synchronous>, transform_indices = @transform_3, window_bounds = array<i64: 1, 16>}, {pipeline_mode = #tpu.pipeline_mode<synchronous>, transform_indices = @transform_4, window_bounds = array<i64: 1, 16>}, {transform_indices = @transform_5, window_bounds = array<i64: 1, 1, 32>}]} {
    %c0 = arith.constant 0 : index
    %c0_0 = arith.constant 0 : index
    %c0_1 = arith.constant 0 : index
    %0 = vector.load %arg1[%c0, %c0_0, %c0_1] : memref<1x32x14xf32, #tpu.memory_space<vmem>>, vector<1x32x14xf32>
    %1 = vector.shape_cast %0 : vector<1x32x14xf32> to vector<32x14xf32>
    %c0_2 = arith.constant 0 : index
    %c0_3 = arith.constant 0 : index
    %2 = vector.load %arg2[%c0_2, %c0_3] : memref<14x128xf32, #tpu.memory_space<vmem>>, vector<14x128xf32>
    %cst = arith.constant dense<0.000000e+00> : vector<32x128xf32>
    %3 = tpu.matmul %1, %2, %cst {dimension_numbers = #tpu.dot_dimension_numbers<[1], [0], [0], [1], [0, 0, 1, 1], [], []>} : vector<32x14xf32>, vector<14x128xf32>, vector<32x128xf32> -> vector<32x128xf32>
    %4 = vector.shape_cast %3 : vector<32x128xf32> to vector<1x32x128xf32>
    %cst_4 = arith.constant 0.000000e+00 : f32
    %5 = vector.broadcast %cst_4 : f32 to vector<1x16x128xf32>
    %c0_5 = arith.constant 0 : index
    %c0_6 = arith.constant 0 : index
    %c0_7 = arith.constant 0 : index
    %6 = vector.load %arg7[%c0_5, %c0_6, %c0_7] : memref<1x48x128xf32, #tpu.memory_space<vmem>>, vector<1x16x128xf32>
    tpu.vector_store %arg7[%c0_5, %c0_6, %c0_7], %5 {strides = array<i32>} : memref<1x48x128xf32, #tpu.memory_space<vmem>>, vector<1x16x128xf32>,
    %7 = vector.extract_strided_slice %4 {offsets = [0, 0, 0], sizes = [1, 32, 8], strides = [1, 1, 1]} : vector<1x32x128xf32> to vector<1x32x8xf32>
    %c0_8 = arith.constant 0 : index
    %c15 = arith.constant 15 : index
    %c0_9 = arith.constant 0 : index
    %8 = vector.load %arg7[%c0_8, %c15, %c0_9] : memref<1x48x128xf32, #tpu.memory_space<vmem>>, vector<1x32x8xf32>
    tpu.vector_store %arg7[%c0_8, %c15, %c0_9], %7 {strides = array<i32>} : memref<1x48x128xf32, #tpu.memory_space<vmem>>, vector<1x32x8xf32>,
    %9 = vector.extract_strided_slice %4 {offsets = [0, 0, 8], sizes = [1, 32, 8], strides = [1, 1, 1]} : vector<1x32x128xf32> to vector<1x32x8xf32>
    %c0_10 = arith.constant 0 : index
    %c14 = arith.constant 14 : index
    %c8 = arith.constant 8 : index
    %10 = vector.load %arg7[%c0_10, %c14, %c8] : memref<1x48x128xf32, #tpu.memory_space<vmem>>, vector<1x32x8xf32>
    tpu.vector_store %arg7[%c0_10, %c14, %c8], %9 {strides = array<i32>} : memref<1x48x128xf32, #tpu.memory_space<vmem>>, vector<1x32x8xf32>,
    %11 = vector.extract_strided_slice %4 {offsets = [0, 0, 16], sizes = [1, 32, 8], strides = [1, 1, 1]} : vector<1x32x128xf32> to vector<1x32x8xf32>
    %c0_11 = arith.constant 0 : index
    %c13 = arith.constant 13 : index
    %c16 = arith.constant 16 : index
    %12 = vector.load %arg7[%c0_11, %c13, %c16] : memref<1x48x128xf32, #tpu.memory_space<vmem>>, vector<1x32x8xf32>
    tpu.vector_store %arg7[%c0_11, %c13, %c16], %11 {strides = array<i32>} : memref<1x48x128xf32, #tpu.memory_space<vmem>>, vector<1x32x8xf32>,
    %13 = vector.extract_strided_slice %4 {offsets = [0, 0, 24], sizes = [1, 32, 8], strides = [1, 1, 1]} : vector<1x32x128xf32> to vector<1x32x8xf32>
    %c0_12 = arith.constant 0 : index
    %c12 = arith.constant 12 : index
    %c24 = arith.constant 24 : index
    %14 = vector.load %arg7[%c0_12, %c12, %c24] : memref<1x48x128xf32, #tpu.memory_space<vmem>>, vector<1x32x8xf32>
    tpu.vector_store %arg7[%c0_12, %c12, %c24], %13 {strides = array<i32>} : memref<1x48x128xf32, #tpu.memory_space<vmem>>, vector<1x32x8xf32>,
    %15 = vector.extract_strided_slice %4 {offsets = [0, 0, 32], sizes = [1, 32, 8], strides = [1, 1, 1]} : vector<1x32x128xf32> to vector<1x32x8xf32>
    %c0_13 = arith.constant 0 : index
    %c11 = arith.constant 11 : index
    %c32 = arith.constant 32 : index
    %16 = vector.load %arg7[%c0_13, %c11, %c32] : memref<1x48x128xf32, #tpu.memory_space<vmem>>, vector<1x32x8xf32>
    tpu.vector_store %arg7[%c0_13, %c11, %c32], %15 {strides = array<i32>} : memref<1x48x128xf32, #tpu.memory_space<vmem>>, vector<1x32x8xf32>,
    %17 = vector.extract_strided_slice %4 {offsets = [0, 0, 40], sizes = [1, 32, 8], strides = [1, 1, 1]} : vector<1x32x128xf32> to vector<1x32x8xf32>
    %c0_14 = arith.constant 0 : index
    %c10 = arith.constant 10 : index
    %c40 = arith.constant 40 : index
    %18 = vector.load %arg7[%c0_14, %c10, %c40] : memref<1x48x128xf32, #tpu.memory_space<vmem>>, vector<1x32x8xf32>
    tpu.vector_store %arg7[%c0_14, %c10, %c40], %17 {strides = array<i32>} : memref<1x48x128xf32, #tpu.memory_space<vmem>>, vector<1x32x8xf32>,
    %19 = vector.extract_strided_slice %4 {offsets = [0, 0, 48], sizes = [1, 32, 8], strides = [1, 1, 1]} : vector<1x32x128xf32> to vector<1x32x8xf32>
    %c0_15 = arith.constant 0 : index
    %c9 = arith.constant 9 : index
    %c48 = arith.constant 48 : index
    %20 = vector.load %arg7[%c0_15, %c9, %c48] : memref<1x48x128xf32, #tpu.memory_space<vmem>>, vector<1x32x8xf32>
    tpu.vector_store %arg7[%c0_15, %c9, %c48], %19 {strides = array<i32>} : memref<1x48x128xf32, #tpu.memory_space<vmem>>, vector<1x32x8xf32>,
    %21 = vector.extract_strided_slice %4 {offsets = [0, 0, 56], sizes = [1, 32, 8], strides = [1, 1, 1]} : vector<1x32x128xf32> to vector<1x32x8xf32>
    %c0_16 = arith.constant 0 : index
    %c8_17 = arith.constant 8 : index
    %c56 = arith.constant 56 : index
    %22 = vector.load %arg7[%c0_16, %c8_17, %c56] : memref<1x48x128xf32, #tpu.memory_space<vmem>>, vector<1x32x8xf32>
    tpu.vector_store %arg7[%c0_16, %c8_17, %c56], %21 {strides = array<i32>} : memref<1x48x128xf32, #tpu.memory_space<vmem>>, vector<1x32x8xf32>,
    %23 = vector.extract_strided_slice %4 {offsets = [0, 0, 64], sizes = [1, 32, 8], strides = [1, 1, 1]} : vector<1x32x128xf32> to vector<1x32x8xf32>
    %c0_18 = arith.constant 0 : index
    %c7 = arith.constant 7 : index
    %c64 = arith.constant 64 : index
    %24 = vector.load %arg7[%c0_18, %c7, %c64] : memref<1x48x128xf32, #tpu.memory_space<vmem>>, vector<1x32x8xf32>
    tpu.vector_store %arg7[%c0_18, %c7, %c64], %23 {strides = array<i32>} : memref<1x48x128xf32, #tpu.memory_space<vmem>>, vector<1x32x8xf32>,
    %25 = vector.extract_strided_slice %4 {offsets = [0, 0, 72], sizes = [1, 32, 8], strides = [1, 1, 1]} : vector<1x32x128xf32> to vector<1x32x8xf32>
    %c0_19 = arith.constant 0 : index
    %c6 = arith.constant 6 : index
    %c72 = arith.constant 72 : index
    %26 = vector.load %arg7[%c0_19, %c6, %c72] : memref<1x48x128xf32, #tpu.memory_space<vmem>>, vector<1x32x8xf32>
    tpu.vector_store %arg7[%c0_19, %c6, %c72], %25 {strides = array<i32>} : memref<1x48x128xf32, #tpu.memory_space<vmem>>, vector<1x32x8xf32>,
    %27 = vector.extract_strided_slice %4 {offsets = [0, 0, 80], sizes = [1, 32, 8], strides = [1, 1, 1]} : vector<1x32x128xf32> to vector<1x32x8xf32>
    %c0_20 = arith.constant 0 : index
    %c5 = arith.constant 5 : index
    %c80 = arith.constant 80 : index
    %28 = vector.load %arg7[%c0_20, %c5, %c80] : memref<1x48x128xf32, #tpu.memory_space<vmem>>, vector<1x32x8xf32>
    tpu.vector_store %arg7[%c0_20, %c5, %c80], %27 {strides = array<i32>} : memref<1x48x128xf32, #tpu.memory_space<vmem>>, vector<1x32x8xf32>,
    %29 = vector.extract_strided_slice %4 {offsets = [0, 0, 88], sizes = [1, 32, 8], strides = [1, 1, 1]} : vector<1x32x128xf32> to vector<1x32x8xf32>
    %c0_21 = arith.constant 0 : index
    %c4 = arith.constant 4 : index
    %c88 = arith.constant 88 : index
    %30 = vector.load %arg7[%c0_21, %c4, %c88] : memref<1x48x128xf32, #tpu.memory_space<vmem>>, vector<1x32x8xf32>
    tpu.vector_store %arg7[%c0_21, %c4, %c88], %29 {strides = array<i32>} : memref<1x48x128xf32, #tpu.memory_space<vmem>>, vector<1x32x8xf32>,
    %31 = vector.extract_strided_slice %4 {offsets = [0, 0, 96], sizes = [1, 32, 8], strides = [1, 1, 1]} : vector<1x32x128xf32> to vector<1x32x8xf32>
    %c0_22 = arith.constant 0 : index
    %c3 = arith.constant 3 : index
    %c96 = arith.constant 96 : index
    %32 = vector.load %arg7[%c0_22, %c3, %c96] : memref<1x48x128xf32, #tpu.memory_space<vmem>>, vector<1x32x8xf32>
    tpu.vector_store %arg7[%c0_22, %c3, %c96], %31 {strides = array<i32>} : memref<1x48x128xf32, #tpu.memory_space<vmem>>, vector<1x32x8xf32>,
    %33 = vector.extract_strided_slice %4 {offsets = [0, 0, 104], sizes = [1, 32, 8], strides = [1, 1, 1]} : vector<1x32x128xf32> to vector<1x32x8xf32>
    %c0_23 = arith.constant 0 : index
    %c2 = arith.constant 2 : index
    %c104 = arith.constant 104 : index
    %34 = vector.load %arg7[%c0_23, %c2, %c104] : memref<1x48x128xf32, #tpu.memory_space<vmem>>, vector<1x32x8xf32>
    tpu.vector_store %arg7[%c0_23, %c2, %c104], %33 {strides = array<i32>} : memref<1x48x128xf32, #tpu.memory_space<vmem>>, vector<1x32x8xf32>,
    %35 = vector.extract_strided_slice %4 {offsets = [0, 0, 112], sizes = [1, 32, 8], strides = [1, 1, 1]} : vector<1x32x128xf32> to vector<1x32x8xf32>
    %c0_24 = arith.constant 0 : index
    %c1 = arith.constant 1 : index
    %c112 = arith.constant 112 : index
    %36 = vector.load %arg7[%c0_24, %c1, %c112] : memref<1x48x128xf32, #tpu.memory_space<vmem>>, vector<1x32x8xf32>
    tpu.vector_store %arg7[%c0_24, %c1, %c112], %35 {strides = array<i32>} : memref<1x48x128xf32, #tpu.memory_space<vmem>>, vector<1x32x8xf32>,
    %37 = vector.extract_strided_slice %4 {offsets = [0, 0, 120], sizes = [1, 32, 8], strides = [1, 1, 1]} : vector<1x32x128xf32> to vector<1x32x8xf32>
    %c0_25 = arith.constant 0 : index
    %c0_26 = arith.constant 0 : index
    %c120 = arith.constant 120 : index
    %38 = vector.load %arg7[%c0_25, %c0_26, %c120] : memref<1x48x128xf32, #tpu.memory_space<vmem>>, vector<1x32x8xf32>
    tpu.vector_store %arg7[%c0_25, %c0_26, %c120], %37 {strides = array<i32>} : memref<1x48x128xf32, #tpu.memory_space<vmem>>, vector<1x32x8xf32>,
    %c0_27 = arith.constant 0 : index
    %c0_28 = arith.constant 0 : index
    %c0_29 = arith.constant 0 : index
    %39 = vector.load %arg7[%c0_27, %c0_28, %c0_29] : memref<1x48x128xf32, #tpu.memory_space<vmem>>, vector<1x32x128xf32>
    %40 = vector.shape_cast %39 : vector<1x32x128xf32> to vector<32x128xf32>
    %c0_30 = arith.constant 0 : index
    %c0_31 = arith.constant 0 : index
    %41 = vector.load %arg3[%c0_30, %c0_31] : memref<128x16xf32, #tpu.memory_space<vmem>>, vector<128x16xf32>
    %cst_32 = arith.constant dense<0.000000e+00> : vector<32x16xf32>
    %42 = tpu.matmul %40, %41, %cst_32 {dimension_numbers = #tpu.dot_dimension_numbers<[1], [0], [0], [1], [0, 0, 1, 1], [], []>} : vector<32x128xf32>, vector<128x16xf32>, vector<32x16xf32> -> vector<32x16xf32>
    %c0_33 = arith.constant 0 : index
    %c0_34 = arith.constant 0 : index
    %43 = vector.load %arg4[%c0_33, %c0_34] : memref<1x16xf32, #tpu.memory_space<vmem>>, vector<1x16xf32>
    %44 = vector.broadcast %43 : vector<1x16xf32> to vector<32x16xf32>
    %45 = arith.addf %42, %44 : vector<32x16xf32>
    %46 = math.tanh %45 : vector<32x16xf32>
    %c0_35 = arith.constant 0 : index
    %c0_36 = arith.constant 0 : index
    %47 = vector.load %arg5[%c0_35, %c0_36] : memref<1x16xf32, #tpu.memory_space<vmem>>, vector<1x16xf32>
    %48 = vector.broadcast %47 : vector<1x16xf32> to vector<32x16xf32>
    %49 = arith.mulf %46, %48 : vector<32x16xf32>
    %50 = vector.shape_cast %49 : vector<32x16xf32> to vector<1x32x16xf32>
    %cst_37 = arith.constant dense<0.000000e+00> : vector<1x32xf32>
    %51 = vector.multi_reduction <add>, %50, %cst_37 [2] : vector<1x32x16xf32> to vector<1x32xf32>
    %52 = vector.shape_cast %51 : vector<1x32xf32> to vector<1x1x32xf32>
    %c0_38 = arith.constant 0 : index
    %c0_39 = arith.constant 0 : index
    %c0_40 = arith.constant 0 : index
    %53 = vector.load %arg6[%c0_38, %c0_39, %c0_40] : memref<1x1x32xf32, #tpu.memory_space<vmem>>, vector<1x1x32xf32>
    tpu.vector_store %arg6[%c0_38, %c0_39, %c0_40], %52 {strides = array<i32>} : memref<1x1x32xf32, #tpu.memory_space<vmem>>, vector<1x1x32xf32>,
    return
  }
  func.func @transform_0(%arg0: i32) -> (i32, i32, i32) {
    %c0_i32 = arith.constant 0 : i32
    %c0_i32_0 = arith.constant 0 : i32
    %c0_i32_1 = arith.constant 0 : i32
    return %arg0, %c0_i32, %c0_i32_0 : i32, i32, i32
  }
  func.func @transform_1(%arg0: i32) -> (i32, i32) {
    %c0_i32 = arith.constant 0 : i32
    %c0_i32_0 = arith.constant 0 : i32
    %c0_i32_1 = arith.constant 0 : i32
    return %c0_i32, %c0_i32_0 : i32, i32
  }
  func.func @transform_2(%arg0: i32) -> (i32, i32) {
    %c0_i32 = arith.constant 0 : i32
    %c0_i32_0 = arith.constant 0 : i32
    %c0_i32_1 = arith.constant 0 : i32
    return %c0_i32, %c0_i32_0 : i32, i32
  }
  func.func @transform_3(%arg0: i32) -> (i32, i32) {
    %c0_i32 = arith.constant 0 : i32
    %c0_i32_0 = arith.constant 0 : i32
    %c0_i32_1 = arith.constant 0 : i32
    return %c0_i32, %c0_i32_0 : i32, i32
  }
  func.func @transform_4(%arg0: i32) -> (i32, i32) {
    %c0_i32 = arith.constant 0 : i32
    %c0_i32_0 = arith.constant 0 : i32
    %c0_i32_1 = arith.constant 0 : i32
    return %c0_i32, %c0_i32_0 : i32, i32
  }
  func.func @transform_5(%arg0: i32) -> (i32, i32, i32) {
    %c0_i32 = arith.constant 0 : i32
    %c0_i32_0 = arith.constant 0 : i32
    %c0_i32_1 = arith.constant 0 : i32
    return %arg0, %c0_i32, %c0_i32_0 : i32, i32, i32
  }
}

</mosaic_0001>

<bundles_post_ra>
// kernel: tpu_custom_call.1
= control target key start
LH: loop header
LB: loop body
LE: loop exit
PB: predicated region body
PF: predicated region fallthrough
CT: control target
= control target key end

     0   :  { %10 = vsyncpa [#allocation4], 0  ;;  %s1173_s0 = inlined_call_operand.vmem [shape: f32[2,32,14], index: 0, kind: input, shape index: {}]   ;;  %s1174_s1 = inlined_call_operand.vmem [shape: f32[14,128], index: 1, kind: input, shape index: {}]   ;;  %s1175_s2 = inlined_call_operand.vmem [shape: f32[128,16], index: 2, kind: input, shape index: {}]   ;;  %s1176_s3 = inlined_call_operand.vmem [shape: f32[1,16], index: 3, kind: input, shape index: {}]   ;;  %s1177_s4 = inlined_call_operand.vmem [shape: f32[1,16], index: 4, kind: input, shape index: {}]   ;;  %s1178_s5 = inlined_call_operand.hbm [shape: f32[2,1,32], index: 5, kind: output, shape index: {}]  }
   0x1   :  { %12 = vsyncpa [#allocation4 + $0x1], 0  ;;  %s926_s18 = smov 0   ;;  %s928_s19 = smov 0  }
   0x2   :  { %s930_s20 = smov 0   ;;  %s932_s21 = smov 0  }
   0x3 LB: > { %s947_s22 = sadd.s32 4294967295, %s891_s21   ;;  %s651_s23 = sadd.s32 4294967294, %s891_s21   ;;  %s891_s21 = sphi %s932_s21, %s1184_s21   ;;  %s887_s20 = sphi %s930_s20, %s1183_s20   ;;  %s883_s19 = sphi %s928_s19, %s1182_s19   ;;  %s879_s18 = sphi %s926_s18, %s1181_s18  }
   0x4   : > { %s951_s24 = sadd.s32 1, %s891_s21   ;;  %s135_s25 = sadd.s32 1, %s887_s20 }
   0x5   : > { %s132_s26 = ssub.s32 %s891_s21, %s951_s24  ;;  %p145_p0 = scmp.ne.s32.totalorder %s887_s20, %s883_s19 }
   0x6   : > { %p133_p1 = scmp.eq.s32.totalorder %s132_s26, 0  ;;  %p146_p2 = scmp.eq.s32.totalorder %s947_s22, 1 }
   0x7   : > { %p151_p3 = scmp.ne.s32.totalorder %s883_s19, %s879_s18  ;;  %p152_p4 = scmp.eq.s32.totalorder %s651_s23, 1 }
   0x8   : > { %s962_s27 = scalar_select %p133_p1, %s887_s20, %s135_s25  }
   0x9   : > { %p964_p5 = por %p146_p2, %p145_p0  ;;  %p968_p6 = por %p152_p4, %p151_p3 }
   0xa   : > { %p654_p7 = scmp.ge.s32.totalorder %s891_s21, 1  ;;  %p190_p8 = scmp.lt.s32.totalorder %s891_s21, 3 }
   0xc   : > { %p191_p9 = pnand %p654_p7, %p190_p8 }
   0xd   : > { %v226_v0 = vld [vmem:[%s1174_s1] sm:$0xff] (!%p191_p9)  ;;  %v227_v1 = vld [vmem:[%s1174_s1 + $0x8] sm:$0x3f] (!%p191_p9)  ;;  %vm241_vm0 = vcmask (!%p191_p9), 1045504   ;;  %p217_p10 = scmp.lt.s32.totalorder (!%p191_p9), %s947_s22, 1  ;;  %vm893_vm1 = vmmov (!%p191_p9), 1   ;;  %v556_v62 = vlaneseq (!%p191_p9) }
   0xe   : > { %194 = sbr.rel (%p191_p9) target bundleno = 672 (0x2a0), region = 40  ;;  %v742_v2 = vpack.c.bf16 (!%p191_p9), %v227_v1, %v226_v0  ;;  %vm743_vm2 = vmpackc.low (!%p191_p9), %vm241_vm0, %vm893_vm1  ;;  %v416_v3 = vld [vmem:[%s1175_s2] sm:$0xff] (!%p191_p9)  ;;  %v417_v4 = vld [vmem:[%s1175_s2 + $0x8] sm:$0xff] (!%p191_p9)  ;;  %vm228_vm3 = vcmask (!%p191_p9), 113664   ;;  %v894_v16 = vmov (!%p191_p9), 0.0   ;;  %vm332_vm4 = vcmask (!%p191_p9), 64512  }
   0xf   : > { %v748_v5 = vpack.c.bf16 (!%p191_p9), %v417_v4, %v416_v3  ;;  %v418_v6 = vld [vmem:[%s1175_s2 + $0x10] sm:$0xff] (!%p191_p9)  ;;  %v419_v7 = vld [vmem:[%s1175_s2 + $0x18] sm:$0xff] (!%p191_p9)  ;;  %v420_v13 = vld [vmem:[%s1175_s2 + $0x20] sm:$0xff] (!%p191_p9)  ;;  %330 = vst [vmem:[#allocation2] sm:$0xff] (!%p191_p9), %v894_v16  ;;  %vm337_vm5 = vcmask (!%p191_p9), 130112   ;;  %vm342_vm6 = vcmask (!%p191_p9), 195712  }
  0x10   : > { %744 = vmatprep.subr.msk.bf16.mxu0 (!%p191_p9), %vm743_vm2, %v742_v2  ;;  %v752_v8 = vpack.c.bf16 (!%p191_p9), %v419_v7, %v418_v6  ;;  %v421_v14 = vld [vmem:[%s1175_s2 + $0x28] sm:$0xff] (!%p191_p9)  ;;  %331 = vst [vmem:[#allocation2 + $0x8] sm:$0xff] (!%p191_p9), %v894_v16  ;;  %v422_v17 = vld [vmem:[%s1175_s2 + $0x30] sm:$0xff] (!%p191_p9)  ;;  %v423_v18 = vld [vmem:[%s1175_s2 + $0x38] sm:$0xff] (!%p191_p9)  ;;  %vm347_vm7 = vcmask (!%p191_p9), 261312   ;;  %vm352_vm8 = vcmask (!%p191_p9), 326912  }
  0x11   : > { %747 = vmatpush3.bf16.msk.msra.mxu0 (!%p191_p9), %vm743_vm2, %v742_v2  ;;  %749 = vmatprep.subr.bf16.mxu1 (!%p191_p9), %v748_v5  ;;  %v756_v15 = vpack.c.bf16 (!%p191_p9), %v421_v14, %v420_v13  ;;  %v760_v19 = vpack.c.bf16 (!%p191_p9), %v423_v18, %v422_v17  ;;  %v424_v20 = vld [vmem:[%s1175_s2 + $0x40] sm:$0xff] (!%p191_p9)  ;;  %v425_v21 = vld [vmem:[%s1175_s2 + $0x48] sm:$0xff] (!%p191_p9)  ;;  %v426_v23 = vld [vmem:[%s1175_s2 + $0x50] sm:$0xff] (!%p191_p9)  ;;  %vm357_vm9 = vcmask (!%p191_p9), 392512   ;;  %vm362_vm10 = vcmask (!%p191_p9), 458112   ;;  %s664_s25 = sshll.u32 (!%p191_p9), %s947_s22, 4 }
  0x12   : > { %751 = vmatpush3.bf16.msra.mxu1 (!%p191_p9), %v748_v5  ;;  %v764_v22 = vpack.c.bf16 (!%p191_p9), %v425_v21, %v424_v20  ;;  %v427_v24 = vld [vmem:[%s1175_s2 + $0x58] sm:$0xff] (!%p191_p9)  ;;  %v428_v26 = vld [vmem:[%s1175_s2 + $0x60] sm:$0xff] (!%p191_p9)  ;;  %v429_v27 = vld [vmem:[%s1175_s2 + $0x68] sm:$0xff] (!%p191_p9)  ;;  %vm367_vm11 = vcmask (!%p191_p9), 523712   ;;  %vm372_vm12 = vcmask (!%p191_p9), 589312   ;;  %vm377_vm13 = vcmask (!%p191_p9), 654912   ;;  %s1130_s8 = scalar_lea.hbm (!%p191_p9), %s1178_s5, %s664_s25 }
  0x13   : > { %753 = vmatprep.subr.bf16.mxu1 (!%p191_p9), %v752_v8  ;;  %v768_v25 = vpack.c.bf16 (!%p191_p9), %v427_v24, %v426_v23  ;;  %v772_v28 = vpack.c.bf16 (!%p191_p9), %v429_v27, %v428_v26  ;;  %v430_v29 = vld [vmem:[%s1175_s2 + $0x70] sm:$0xff] (!%p191_p9)  ;;  %v431_v30 = vld [vmem:[%s1175_s2 + $0x78] sm:$0xff] (!%p191_p9)  ;;  %vm382_vm14 = vcmask (!%p191_p9), 720512   ;;  %vm387_vm15 = vcmask (!%p191_p9), 786112   ;;  %v662_v40 = vld [vmem:[%s1176_s3] ss:$0 sm:$0xff] (!%p191_p9) }
  0x14   : > { %v776_v31 = vpack.c.bf16 (!%p191_p9), %v431_v30, %v430_v29  ;;  %vm392_vm0 = vcmask (!%p191_p9), 851712   ;;  %vm397_vm1 = vcmask (!%p191_p9), 917312   ;;  %vm402_vm2 = vcmask (!%p191_p9), 982912   ;;  %v663_v49 = vld [vmem:[%s1177_s4] ss:$0 sm:$0xff] (!%p191_p9)  ;;  %s895_s10 = smov (!%p191_p9), [#allocation3]  }
  0x15   : > { %s218_s13 = scalar_select %p217_p10, %s947_s22, 1  ;;  %v557_v63 = vand.u32 127, %v556_v62  ;;  %v559_v0 = vshrl.u32 %v556_v62, 7 }
  0x16   : > { %755 = vmatpush3.bf16.msra.mxu1 %v752_v8  ;;  %s833_s11 = sshll.u32 %s895_s10, 4  ;;  %s834_s11 = int_to_ptr.vmem [resolvable:$false] %s833_s11 }
  0x17   : > { %s667_s23 = sshll.u32 %s218_s13, 5  ;;  %757 = vmatprep.subr.bf16.mxu1 %v756_v15  ;;  %v562_v1 = vadd.s32 4294967288, %v557_v63  ;;  %v568_v2 = vadd.s32 4294967280, %v557_v63  ;;  %v560_v4 = vsub.s32 %v557_v63, %v559_v0  ;;  %v574_v6 = vadd.s32 4294967272, %v557_v63  ;;  %s835_s12 = scalar_lea.vmem %s834_s11, 32 }
  0x18   : > { %s221_s30 = scalar_lea.vmem %s1173_s0, %s667_s23  ;;  %s215_s23 = sand.u32 1, %s883_s19  }
  0x19   : > { %v222_v9 = vld [vmem:[%s221_s30] sm:$0xff]  ;;  %v223_v10 = vld [vmem:[%s221_s30 + $0x8] sm:$0xff]  ;;  %v224_v11 = vld [vmem:[%s221_s30 + $0x10] sm:$0xff]  ;;  %v565_v5 = vsub.s32 %v562_v1, %v559_v0  ;;  %v571_v7 = vsub.s32 %v568_v2, %v559_v0  ;;  %s216_s26 = scalar_lea.vmem [#allocation3], %s215_s23  ;;  %s584_s22 = scalar_lea.sflag [#allocation4], %s215_s23 }
  0x1a   : > { %698 = vmatprep.mubr.msk.f32.mxu0 %vm228_vm3, %v222_v9  ;;  %v225_v12 = vld [vmem:[%s221_s30 + $0x18] sm:$0xff]  ;;  %759 = vmatpush3.bf16.msra.mxu1 %v756_v15  ;;  %s596_s30 = sshll.u32 %s216_s26, 4  ;;  %s1132_s30 = int_to_ptr.vmem [resolvable:$true] %s596_s30 }
  0x1b   : > { %699 = vmatmul.mubr.msk.f32.vlgmr.msra.gmra.mrb[0].mxu0 %vm228_vm3, %v223_v10  ;;  %761 = vmatprep.subr.bf16.mxu1 %v760_v19  ;;  %s829_s9 = scalar_lea.vmem %s1132_s30, 16  ;;  %p836_p0 = scmp.lt.s32.totalorder %s1132_s30, %s834_s11 }
  0x1c   : > { %701 = vmatprep.mubr.msk.f32.mxu0 %vm228_vm3, %v224_v11  ;;  %p830_p11 = scmp.ne.s32.totalorder %s1132_s30, %s829_s9  ;;  %p837_p1 = scmp.lt.s32.totalorder %s835_s12, %s829_s9 }
  0x1e   : > { %763 = vmatpush3.bf16.msra.mxu1 %v760_v19  ;;  %p831_p12 = pnand %p830_p11, %p964_p5  ;;  %p838_p2 = por %p837_p1, %p836_p0 }
  0x1f   : > { %702 = vmatmul.mubr.msk.f32.gmra.mrb[2].mxu0 %vm228_vm3, %v225_v12  ;;  %765 = vmatprep.subr.bf16.mxu1 %v764_v22  ;;  %vm407_vm3 = vcmask 1048512   ;;  %v577_v12 = vsub.s32 %v574_v6, %v559_v0 }
  0x20   : > { %p832_p13 = pneg %p831_p12 }
  0x22   : > { %767 = vmatpush3.bf16.msra.mxu1 %v764_v22  ;;  %p839_p3 = pnand %p838_p2, %p832_p13 }
  0x23   : > { %769 = vmatprep.subr.bf16.mxu1 %v768_v25 }
  0x26   : > { %771 = vmatpush3.bf16.msra.mxu1 %v768_v25 }
  0x27   : > { %773 = vmatprep.subr.bf16.mxu1 %v772_v28 }
  0x2a   : > { %775 = vmatpush3.bf16.msra.mxu1 %v772_v28 }
  0x2b   : > { %777 = vmatprep.subr.bf16.mxu1 %v776_v31 }
  0x2e   : > { %779 = vmatpush3.bf16.msra.mxu1 %v776_v31 }
  0xee   : > { %v1033_v32 = vpop.f32.mrb[0].mxu0 }
  0xef   : > { %v311_v33 = vpop.f32.mrb[1].mxu0  ;;  %334 = vst.msk [vmem:[#allocation2 + $0x17] sm:$0xff] %vm332_vm4, %v1033_v32 }
  0xf0   : > { %333 = vst.msk [vmem:[#allocation2 + $0xf] sm:$0xff] %vm332_vm4, %v311_v33 }
  0xf1   : > { %338 = vst.msk [vmem:[#allocation2 + $0xe] sm:$0xff] %vm337_vm5, %v311_v33  ;;  %339 = vst.msk [vmem:[#allocation2 + $0x16] sm:$0xff] %vm337_vm5, %v1033_v32 }
  0xf2   : > { %v1041_v34 = vpop.f32.mrb[2].mxu0  ;;  %343 = vst.msk [vmem:[#allocation2 + $0xd] sm:$0xff] %vm342_vm6, %v311_v33  ;;  %344 = vst.msk [vmem:[#allocation2 + $0x15] sm:$0xff] %vm342_vm6, %v1033_v32 }
  0xf3   : > { %v321_v35 = vpop.f32.mrb[3].mxu0  ;;  %348 = vst.msk [vmem:[#allocation2 + $0xc] sm:$0xff] %vm347_vm7, %v311_v33  ;;  %349 = vst.msk [vmem:[#allocation2 + $0x14] sm:$0xff] %vm347_vm7, %v1033_v32 }
  0xf4   : > { %335 = vst.msk [vmem:[#allocation2 + $0x1f] sm:$0xff] %vm332_vm4, %v321_v35  ;;  %vm539_vm4 = vcmask 130048  }
  0xf5   : > { %353 = vst.msk [vmem:[#allocation2 + $0xb] sm:$0xff] %vm352_vm8, %v311_v33  ;;  %354 = vst.msk [vmem:[#allocation2 + $0x13] sm:$0xff] %vm352_vm8, %v1033_v32 }
  0xf6   : > { %340 = vst.msk [vmem:[#allocation2 + $0x1e] sm:$0xff] %vm337_vm5, %v321_v35 }
  0xf7   : > { %358 = vst.msk [vmem:[#allocation2 + $0xa] sm:$0xff] %vm357_vm9, %v311_v33  ;;  %359 = vst.msk [vmem:[#allocation2 + $0x12] sm:$0xff] %vm357_vm9, %v1033_v32 }
  0xf8   : > { %345 = vst.msk [vmem:[#allocation2 + $0x1d] sm:$0xff] %vm342_vm6, %v321_v35 }
  0xf9   : > { %363 = vst.msk [vmem:[#allocation2 + $0x9] sm:$0xff] %vm362_vm10, %v311_v33  ;;  %364 = vst.msk [vmem:[#allocation2 + $0x11] sm:$0xff] %vm362_vm10, %v1033_v32 }
  0xfa   : > { %350 = vst.msk [vmem:[#allocation2 + $0x1c] sm:$0xff] %vm347_vm7, %v321_v35 }
  0xfb   : > { %368 = vst.msk [vmem:[#allocation2 + $0x8] sm:$0xff] %vm367_vm11, %v311_v33  ;;  %369 = vst.msk [vmem:[#allocation2 + $0x10] sm:$0xff] %vm367_vm11, %v1033_v32 }
  0xfc   : > { %355 = vst.msk [vmem:[#allocation2 + $0x1b] sm:$0xff] %vm352_vm8, %v321_v35  ;;  %vm581_vm8 = vcmask 253952  }
  0xfd   : > { %373 = vst.msk [vmem:[#allocation2 + $0x7] sm:$0xff] %vm372_vm12, %v311_v33  ;;  %374 = vst.msk [vmem:[#allocation2 + $0xf] sm:$0xff] %vm372_vm12, %v1033_v32 }
  0xfe   : > { %378 = vst.msk [vmem:[#allocation2 + $0x6] sm:$0xff] %vm377_vm13, %v311_v33  ;;  %379 = vst.msk [vmem:[#allocation2 + $0xe] sm:$0xff] %vm377_vm13, %v1033_v32 }
  0xff   : > { %360 = vst.msk [vmem:[#allocation2 + $0x1a] sm:$0xff] %vm357_vm9, %v321_v35 }
 0x100   : > { %383 = vst.msk [vmem:[#allocation2 + $0x5] sm:$0xff] %vm382_vm14, %v311_v33  ;;  %384 = vst.msk [vmem:[#allocation2 + $0xd] sm:$0xff] %vm382_vm14, %v1033_v32 }
 0x101   : > { %365 = vst.msk [vmem:[#allocation2 + $0x19] sm:$0xff] %vm362_vm10, %v321_v35 }
 0x102   : > { %388 = vst.msk [vmem:[#allocation2 + $0x4] sm:$0xff] %vm387_vm15, %v311_v33  ;;  %389 = vst.msk [vmem:[#allocation2 + $0xc] sm:$0xff] %vm387_vm15, %v1033_v32 }
 0x103   : > { %370 = vst.msk [vmem:[#allocation2 + $0x18] sm:$0xff] %vm367_vm11, %v321_v35 }
 0x104   : > { %393 = vst.msk [vmem:[#allocation2 + $0x3] sm:$0xff] %vm392_vm0, %v311_v33  ;;  %394 = vst.msk [vmem:[#allocation2 + $0xb] sm:$0xff] %vm392_vm0, %v1033_v32 }
 0x105   : > { %375 = vst.msk [vmem:[#allocation2 + $0x17] sm:$0xff] %vm372_vm12, %v321_v35  ;;  %376 = vst.msk [vmem:[#allocation2 + $0x1f] sm:$0xff] %vm372_vm12, %v1041_v34 }
 0x106   : > { %398 = vst.msk [vmem:[#allocation2 + $0x2] sm:$0xff] %vm397_vm1, %v311_v33  ;;  %399 = vst.msk [vmem:[#allocation2 + $0xa] sm:$0xff] %vm397_vm1, %v1033_v32 }
 0x107   : > { %380 = vst.msk [vmem:[#allocation2 + $0x16] sm:$0xff] %vm377_vm13, %v321_v35  ;;  %381 = vst.msk [vmem:[#allocation2 + $0x1e] sm:$0xff] %vm377_vm13, %v1041_v34 }
 0x108   : > { %403 = vst.msk [vmem:[#allocation2 + $0x1] sm:$0xff] %vm402_vm2, %v311_v33  ;;  %404 = vst.msk [vmem:[#allocation2 + $0x9] sm:$0xff] %vm402_vm2, %v1033_v32 }
 0x109   : > { %385 = vst.msk [vmem:[#allocation2 + $0x15] sm:$0xff] %vm382_vm14, %v321_v35  ;;  %386 = vst.msk [vmem:[#allocation2 + $0x1d] sm:$0xff] %vm382_vm14, %v1041_v34 }
 0x10a   : > { %408 = vst.msk [vmem:[#allocation2] sm:$0xff] %vm407_vm3, %v311_v33  ;;  %409 = vst.msk [vmem:[#allocation2 + $0x8] sm:$0xff] %vm407_vm3, %v1033_v32 }
 0x10b   : > { %390 = vst.msk [vmem:[#allocation2 + $0x14] sm:$0xff] %vm387_vm15, %v321_v35  ;;  %391 = vst.msk [vmem:[#allocation2 + $0x1c] sm:$0xff] %vm387_vm15, %v1041_v34 }
 0x10c   : > { %395 = vst.msk [vmem:[#allocation2 + $0x13] sm:$0xff] %vm392_vm0, %v321_v35  ;;  %396 = vst.msk [vmem:[#allocation2 + $0x1b] sm:$0xff] %vm392_vm0, %v1041_v34 }
 0x10d   : > { %400 = vst.msk [vmem:[#allocation2 + $0x12] sm:$0xff] %vm397_vm1, %v321_v35  ;;  %401 = vst.msk [vmem:[#allocation2 + $0x1a] sm:$0xff] %vm397_vm1, %v1041_v34 }
 0x10e   : > { %405 = vst.msk [vmem:[#allocation2 + $0x11] sm:$0xff] %vm402_vm2, %v321_v35  ;;  %406 = vst.msk [vmem:[#allocation2 + $0x19] sm:$0xff] %vm402_vm2, %v1041_v34 }
 0x10f   : > { %410 = vst.msk [vmem:[#allocation2 + $0x10] sm:$0xff] %vm407_vm3, %v321_v35  ;;  %411 = vst.msk [vmem:[#allocation2 + $0x18] sm:$0xff] %vm407_vm3, %v1041_v34 }
 0x111   : > { %v412_v36 = vld [vmem:[#allocation2] sm:$0xff]  ;;  %v413_v37 = vld [vmem:[#allocation2 + $0x8] sm:$0xff] }
 0x112   : > { %736 = vmatprep.mubr.f32.mxu1 %v412_v36 }
 0x113   : > { %737 = vmatmul.mubr.f32.vlgmr.msra.gmra.mrb[0].mxu1 %v413_v37 }
 0x116   : > { %v414_v38 = vld [vmem:[#allocation2 + $0x10] sm:$0xff]  ;;  %v415_v39 = vld [vmem:[#allocation2 + $0x18] sm:$0xff] }
 0x117   : > { %739 = vmatprep.mubr.f32.mxu1 %v414_v38 }
 0x118   : > { %740 = vmatmul.mubr.f32.gmra.mrb[2].mxu1 %v415_v39 }
 0x1e6   : > { %v738_v41 = vpop.f32.mrb[0].mxu1 }
 0x1e7   : > { %v511_v42 = vadd.f32 %v738_v41, %v662_v40  ;;  %v505_v43 = vpop.f32.mrb[1].mxu1 }
 0x1e8   : > { %v506_v44 = vadd.f32 %v662_v40, %v505_v43 }
 0x1e9   : > { %821 = vtanh.f32 %v511_v42 }
 0x1ea   : > { %823 = vtanh.f32 %v506_v44 }
 0x1eb   : > { %v741_v45 = vpop.f32.mrb[2].mxu1 }
 0x1ec   : > { %v521_v46 = vadd.f32 %v741_v45, %v662_v40  ;;  %v515_v47 = vpop.f32.mrb[3].mxu1 }
 0x1ed   : > { %v516_v48 = vadd.f32 %v662_v40, %v515_v47 }
 0x1ee   : > { %825 = vtanh.f32 %v521_v46 }
 0x1ef   : > { %827 = vtanh.f32 %v516_v48 }
 0x1f3   : > { %v822_v50 = vpop.eup %821 }
 0x1f4   : > { %v824_v51 = vpop.eup %823  ;;  %v536_v55 = vmul.f32 %v822_v50, %v663_v49 }
 0x1f5   : > { %v535_v52 = vmul.f32 %v824_v51, %v663_v49 }
 0x1f6   : > { %v543_v58 = vsel %vm539_vm4, %v536_v55, 0.0 }
 0x1f7   : > { %v540_v54 = vsel %vm539_vm4, %v535_v52, 0.0 }
 0x1f8   : > { %v826_v53 = vpop.eup %825  ;;  %541 = vadd.xlane.f32.xlu0 %v540_v54 }
 0x1f9   : > { %v828_v56 = vpop.eup %827  ;;  %v538_v60 = vmul.f32 %v826_v53, %v663_v49 }
 0x1fa   : > { %v537_v57 = vmul.f32 %v828_v56, %v663_v49 }
 0x1fb   : > { %v549_v61 = vsel %vm539_vm4, %v538_v60, 0.0 }
 0x1fc   : > { %v546_v59 = vsel %vm539_vm4, %v537_v57, 0.0  ;;  %544 = vadd.xlane.f32.xlu0 %v543_v58 }
 0x1fd   : > { %547 = vadd.xlane.f32.xlu1 %v546_v59 }
 0x201   : > { %550 = vadd.xlane.f32.xlu1 %v549_v61 }
 0x285   : > { %v542_v3 = vpop.xlane.xlu0 %541 }
 0x286   : > { %v561_v10 = vrot.slane %v542_v3, %v560_v4 }
 0x289   : > { %v545_v8 = vpop.xlane.xlu0 %544 }
 0x28a   : > { %v548_v9 = vpop.xlane.xlu1 %547  ;;  %v566_v11 = vrot.slane %v545_v8, %v565_v5 }
 0x28b   : > { %v572_v13 = vrot.slane %v548_v9, %v571_v7 }
 0x28c   : > { %v567_v14 = vsel %vm337_vm5, %v566_v11, %v561_v10 }
 0x28d   : > { %v573_v17 = vsel %vm342_vm6, %v572_v13, %v567_v14 }
 0x28e   : > { %v551_v15 = vpop.xlane.xlu1 %550 }
 0x28f   : > { %v578_v16 = vrot.slane %v551_v15, %v577_v12 }
 0x291   : > { %v579_v18 = vsel %vm347_vm7, %v578_v16, %v573_v17 }
 0x292   : > { %582 = vst.msk [vmem:[%s216_s26] sm:$0x1] %vm581_vm8, %v579_v18 }
 0x293   : > { %842 = shalt.err (!%p839_p3)
}
 0x294   : > { %s843_s13 = scalar_lea.hbm %s1130_s8, 16  ;;  %s847_s16 = scalar_lea.hbm %s1178_s5, 32 }
 0x295   : > { %p844_p4 = scmp.ne.s32.totalorder %s1130_s8, %s843_s13  ;;  %p848_p9 = scmp.lt.u32.totalorder %s1130_s8, %s1178_s5 }
 0x296   : > { %p849_p10 = scmp.lt.u32.totalorder %s847_s16, %s843_s13  ;;  %p851_p12 = scmp.lt.u32.totalorder %s843_s13, %s1130_s8 }
 0x297   : > { %p845_p7 = pnand %p844_p4, %p964_p5 }
 0x298   : > { %p850_p11 = por %p849_p10, %p848_p9 }
 0x299   : > { %p846_p8 = pneg %p845_p7 }
 0x29a   : > { %p852_p13 = por %p851_p12, %p850_p11 }
 0x29c   : > { %p853_p0 = pnand %p852_p13, %p846_p8 }
 0x29e   : > { %856 = shalt.err (!%p853_p0)
}
 0x29f   : > { %780 = dma.vmem_to_hbm [thread:$0]  (%p964_p5), %s1132_s30, 16, %s1130_s8, %s584_s22  }
 0x2a0 PF: > { %p786_p1 = scmp.ge.s32.totalorder %s891_s21, 2  ;;  %s608_s25 = sand.u32 1, %s879_s18  }
 0x2a1   : > { %s609_s26 = scalar_lea.sflag [#allocation4], %s608_s25 }
 0x2a2   : > { %p783_p2 = pnand %p786_p1, %p968_p6 }
 0x2a4   : > { %874 = dma.done.wait (!%p783_p2), %s609_s26, 16  }
 0x2a5   : > { %876 = vsyncadd (!%p783_p2), %s609_s26, 4294967280  ;;  %p15_p3 = scmp.ge.s32.totalorder %s951_s24, 4   ;;  %s1181_s18 = smov %s883_s19 }
 0x2a6   : > { %s1182_s19 = smov %s887_s20  ;;  %s1183_s20 = smov %s962_s27 }
 0x2a7   : > { %s1184_s21 = smov %s951_s24  ;;  %17 = sbr.rel (!%p15_p3) target bundleno = 3 (0x3), region = 75 }
 0x2ae   :  { %613 = vsyncpa [#allocation4], 1 }
 0x2af   :  { %615 = vsyncpa [#allocation4 + $0x1], 1 }

</bundles_post_ra>
